<compile_context>
chip_gen: v5e
topology: v5e:2x2
jax: 0.10.0
libtpu: 0.0.40
codegen_flags: <defaults>
</compile_context>

<pallas_src>
import functools

import jax
import jax.numpy as jnp
from jax.experimental import pallas as pl
from jax.experimental.pallas import tpu as pltpu


_TARGET_BLOCK_BYTES = 4 * 1024 * 1024   # ~85%+ of HBM roofline region (measured v6e)
_MAX_BLOCK_BYTES = 8 * 1024 * 1024      # keeps 4x double-buffered blocks + headroom < v7x's 64 MiB
_SUBLANE = {4: 8, 2: 16, 1: 32}         # sublane tile per itemsize


def _vmem_limit_bytes(block_bytes):
    # in + out, each double-buffered ~= 4 x block (+ tiny scratch + headroom).
    # Only ever raise above the platform scoped default (16 MiB v5e / 32 MiB v6e, v7x).
    return int(min(48 * 1024 * 1024,
                   max(32 * 1024 * 1024, 4 * block_bytes + 8 * 1024 * 1024)))


# ---------------------------------------------------------------------------
# Kernels
# ---------------------------------------------------------------------------

def _diff_time_kernel(x_ref, o_ref, carry_ref):
    """(bblk, tt, cblk) block. out[t] = x[t] - x[t-1]; the very first time row
    of the whole sequence is the constant-0 pad. carry_ref holds the last time
    row of the previous T block (unused garbage when the T axis has 1 step —
    it is masked away)."""
    x = x_ref[...]
    prev = pltpu.roll(x, shift=1, axis=1)                      # XLU sublane rotate (free slot)
    t_idx = jax.lax.broadcasted_iota(jnp.int32, x.shape, dimension=1)
    is_row0 = t_idx == 0
    # Row 0 of `prev` wrapped around inside the block; its true value is the
    # last row of the previous T block, carried in VMEM scratch.
    prev = jnp.where(is_row0, carry_ref[...], prev)
    # Zero pad only for the first row of the first T block.
    pad_row = jnp.logical_and(is_row0, pl.program_id(2) == 0)
    # Single fused, unmasked full-tile store (no second partial write).
    o_ref[...] = jnp.where(pad_row, jnp.zeros_like(x), x - prev)
    # Carry this block's last time row for the next T block.
    carry_ref[...] = x[:, -1:, :]


def _diff_flat_kernel(x_ref, o_ref, *, c):
    """(bblk, T*C) lane-dense block. out = x - roll(x, C) with the first C
    lanes (the t=0 row) zeroed. The whole T*C row is resident, so the roll's
    wraparound only touches the masked lanes."""
    x = x_ref[...]
    prev = pltpu.roll(x, shift=c, axis=1)
    lane = jax.lax.broadcasted_iota(jnp.int32, x.shape, dimension=1)
    o_ref[...] = jnp.where(lane < c, jnp.zeros_like(x), x - prev)


# ---------------------------------------------------------------------------
# Wrappers
# ---------------------------------------------------------------------------

def _flat_path(x, target_bytes):
    """Lane-dense path for C not a multiple of 128: flatten to (B, T*C)."""
    B, T, C = x.shape
    itemsize = x.dtype.itemsize
    sub = _SUBLANE.get(itemsize, 8)
    L = T * C
    if L % 128 != 0:
        return None                              # keep the well-tested lane-dense regime
    # Batch blocks honoring the (sublane, lane) tiling rule: bblk % sub == 0 or bblk == B.
    divs = [d for d in range(1, B + 1) if B % d == 0 and (d % sub == 0 or d == B)]
    row_bytes = L * itemsize
    fitting = [d for d in divs if d * row_bytes <= target_bytes]
    if not fitting:
        fitting = [d for d in divs if d * row_bytes <= _MAX_BLOCK_BYTES]
        if not fitting:
            return None                          # whole-row-resident trick doesn't fit VMEM
    # Prefer >=2 grid steps (v7x megacore), then the biggest block.
    pref = [d for d in fitting if B // d >= 2]
    bblk = max(pref) if pref else max(fitting)
    block_bytes = bblk * row_bytes

    xf = x.reshape(B, L)                         # free contiguous reshape (no transpose)
    out = pl.pallas_call(
        functools.partial(_diff_flat_kernel, c=C),
        out_shape=jax.ShapeDtypeStruct((B, L), x.dtype),
        grid_spec=pltpu.PrefetchScalarGridSpec(
            num_scalar_prefetch=0,
            grid=(B // bblk,),
            in_specs=[pl.BlockSpec((bblk, L), lambda b: (b, 0))],
            out_specs=pl.BlockSpec((bblk, L), lambda b: (b, 0)),
        ),
        compiler_params=pltpu.CompilerParams(
            dimension_semantics=("parallel",),
            vmem_limit_bytes=_vmem_limit_bytes(block_bytes),
        ),
    )(xf)
    return out.reshape(B, T, C)


def _time_path(x, target_bytes, t_block):
    """3-D path: tile B and C; T fully resident when it fits, otherwise (or on
    request) tiled with a 1-row VMEM carry across T blocks."""
    B, T, C = x.shape
    itemsize = x.dtype.itemsize
    sub = _SUBLANE.get(itemsize, 8)

    # Lane (C) tile.
    if C % 128 == 0:
        cblk = 128
        while C % (2 * cblk) == 0 and T * 2 * cblk * itemsize <= target_bytes:
            cblk *= 2
    else:
        cblk = C  # 'block equals full dim' exception (lane-sparse fallback)
        # TODO(synk): for large non-multiple-of-128 C that also overflows the flat
        # path, pad C up to a multiple of 128 in the wrapper to restore lane-dense stores.

    # Batch tile (contiguous slabs, grown toward the target size).
    bblk = 1
    while B % (2 * bblk) == 0 and 2 * bblk * T * cblk * itemsize <= target_bytes:
        bblk *= 2

    # v7x megacore: prefer >=2 (evenly split) steps on the parallel axes.
    if (B // bblk) * (C // cblk) < 2:
        if cblk > 128 and cblk % 256 == 0:
            cblk //= 2
        elif bblk > 1:
            bblk //= 2

    # Time tile.
    if t_block is not None:
        tt = t_block
    elif bblk * T * cblk * itemsize > _MAX_BLOCK_BYTES:
        tt = T
        while (tt % 2 == 0 and (tt // 2) % sub == 0
               and bblk * tt * cblk * itemsize > _MAX_BLOCK_BYTES):
            tt //= 2
    else:
        tt = T
    assert T % tt == 0 and (tt == T or tt % sub == 0), (T, tt, sub)

    block_bytes = bblk * tt * cblk * itemsize
    return pl.pallas_call(
        _diff_time_kernel,
        out_shape=jax.ShapeDtypeStruct((B, T, C), x.dtype),
        grid_spec=pltpu.PrefetchScalarGridSpec(
            num_scalar_prefetch=0,
            grid=(B // bblk, C // cblk, T // tt),   # T last: sequential carry axis
            in_specs=[pl.BlockSpec((bblk, tt, cblk), lambda b, c, t: (b, t, c))],
            out_specs=pl.BlockSpec((bblk, tt, cblk), lambda b, c, t: (b, t, c)),
            scratch_shapes=[pltpu.VMEM((bblk, 1, cblk), x.dtype)],
        ),
        compiler_params=pltpu.CompilerParams(
            dimension_semantics=("parallel", "parallel", "arbitrary"),
            vmem_limit_bytes=_vmem_limit_bytes(block_bytes),
        ),
    )(x)


def temporal_difference(x, *, t_block=None, target_block_bytes=_TARGET_BLOCK_BYTES):
    """Pallas TPU implementation of TemporalDifferenceModule.forward for (B, T, C) x."""
    _, _, C = x.shape
    if t_block is None and C % 128 != 0:
        out = _flat_path(x, target_block_bytes)
        if out is not None:
            return out
    return _time_path(x, target_block_bytes, t_block)


def _reference(x):
    diff = x[:, 1:, :] - x[:, :-1, :]
    return jnp.concatenate(
        [jnp.zeros((x.shape[0], 1, x.shape[2]), x.dtype), diff], axis=1)


if __name__ == "__main__":
    key = jax.random.PRNGKey(0)
    k1, k2, k3 = jax.random.split(key, 3)

    # 1) Small / odd-C demo shape -> flattened lane-dense path (roll by C lanes).
    x1 = jax.random.normal(k1, (2, 8, 32), dtype=jnp.float32)
    o1 = jax.block_until_ready(temporal_difference(x1))
    assert o1.shape == x1.shape
    assert jnp.allclose(o1, _reference(x1), atol=1e-6), "mismatch (flat path)"

    # 2) Lane-dense C (multiple of 128), full-T blocks, fused zero row.
    x2 = jax.random.normal(k2, (4, 16, 256), dtype=jnp.float32)
    o2 = jax.block_until_ready(temporal_difference(x2))
    assert jnp.allclose(o2, _reference(x2), atol=1e-6), "mismatch (full-T path)"

    # 3) Explicit T tiling exercises the 1-row VMEM carry across T blocks.
    x3 = jax.random.normal(k3, (2, 32, 256), dtype=jnp.float32)
    o3 = jax.block_until_ready(temporal_difference(x3, t_block=8))
    assert jnp.allclose(o3, _reference(x3), atol=1e-6), "mismatch (T-tiled path)"

    print("KERNEL_OK")
</pallas_src>

<mosaic_0001>
module attributes {stable_mosaic.version = 11 : i64} {
  func.func @_diff_flat_kernel(%arg0: i32, %arg1: memref<2x256xf32, #tpu.memory_space<vmem>>, %arg2: memref<2x256xf32, #tpu.memory_space<vmem>>) attributes {dimension_semantics = [#tpu.dimension_semantics<parallel>], iteration_bounds = array<i64: 1>, scalar_prefetch = 0 : i64, scratch_operands = 0 : i64, tpu.core_type = #tpu.core_type<tc>, window_params = [{transform_indices = @transform_0, window_bounds = array<i64: 2, 256>}, {transform_indices = @transform_1, window_bounds = array<i64: 2, 256>}]} {
    %c0 = arith.constant 0 : index
    %c0_0 = arith.constant 0 : index
    %0 = vector.load %arg1[%c0, %c0_0] : memref<2x256xf32, #tpu.memory_space<vmem>>, vector<2x256xf32>
    %c32_i32 = arith.constant 32 : i32
    %1 = tpu.dynamic_rotate %0 by %c32_i32 dim 1 : vector<2x256xf32>, i32 -> vector<2x256xf32>
    %2 = tpu.iota {dimensions = array<i32: 1>} : vector<2x256xi32>
    %c32_i32_1 = arith.constant 32 : i32
    %3 = vector.broadcast %c32_i32_1 : i32 to vector<2x256xi32>
    %4 = arith.cmpi slt, %2, %3 : vector<2x256xi32>
    %cst = arith.constant 0.000000e+00 : f32
    %5 = vector.broadcast %cst : f32 to vector<2x256xf32>
    %6 = arith.subf %0, %1 : vector<2x256xf32>
    %7 = arith.select %4, %5, %6 : vector<2x256xi1>, vector<2x256xf32>
    %c0_2 = arith.constant 0 : index
    %c0_3 = arith.constant 0 : index
    %8 = vector.load %arg2[%c0_2, %c0_3] : memref<2x256xf32, #tpu.memory_space<vmem>>, vector<2x256xf32>
    tpu.vector_store %arg2[%c0_2, %c0_3], %7 {strides = array<i32>} : memref<2x256xf32, #tpu.memory_space<vmem>>, vector<2x256xf32>,
    return
  }
  func.func @transform_0(%arg0: i32) -> (i32, i32) {
    %c0_i32 = arith.constant 0 : i32
    %c0_i32_0 = arith.constant 0 : i32
    return %arg0, %c0_i32 : i32, i32
  }
  func.func @transform_1(%arg0: i32) -> (i32, i32) {
    %c0_i32 = arith.constant 0 : i32
    %c0_i32_0 = arith.constant 0 : i32
    return %arg0, %c0_i32 : i32, i32
  }
}

</mosaic_0001>

<bundles_post_ra>
// kernel: tpu_custom_call.1
= control target key start
LH: loop header
LB: loop body
LE: loop exit
PB: predicated region body
PF: predicated region fallthrough
CT: control target
= control target key end

     0   :  { %6 = vsyncpa [#allocation3], 0  ;;  %s155_s0 = inlined_call_operand.hbm [shape: f32[2,256], index: 0, kind: input, shape index: {}]   ;;  %s156_s1 = inlined_call_operand.hbm [shape: f32[2,256], index: 1, kind: output, shape index: {}]  }
   0x1   :  { %7 = vsyncpa [#allocation4], 0  ;;  %s13_s8 = sshll.u32 %s155_s0, 4  ;;  %s134_s9 = smov [#allocation2]   ;;  %s14_s8 = int_to_ptr.hbm [resolvable:$true] %s13_s8 }
   0x2   :  { %s15_s10 = sshll.u32 %s134_s9, 4  ;;  %s16_s10 = int_to_ptr.vmem [resolvable:$true] %s15_s10 }
   0x3   :  { %18 = dma.hbm_to_vmem [thread:$0]  %s14_s8, 64, %s16_s10, [#allocation3]  }
   0x4   :  { %130 = dma.done.wait [#allocation3], 64  }
   0x5   :  { %131 = vsyncadd [#allocation3], 4294967232  ;;  %v23_v0 = vld [vmem:[#allocation2] sm:$0xf]  ;;  %s135_s11 = smov 32   ;;  %v34_v3 = vlaneseq  ;;  %vm44_vm1 = vcmask 1041408  }
   0x6   :  { %25 = vst [vmem:[#allocation1] ss:$4 sm:$0xff] %v23_v0  ;;  %s136_s0 = smov [#allocation5]   ;;  %s69_s15 = sshll.u32 %s156_s1, 4  ;;  %s70_s15 = int_to_ptr.hbm [resolvable:$true] %s69_s15 }
   0x7   :  { %v35_v5 = vand.u32 127, %v34_v3  ;;  %s67_s12 = sshll.u32 %s136_s0, 4  ;;  %s68_s12 = int_to_ptr.vmem [resolvable:$true] %s67_s12 }
   0x9   :  { %vm36_vm0 = vcmp.lt.s32.totalorder %v35_v5, 32 }
   0xd   :  { %v26_v1 = vld.sshfl [vmem:[#allocation1] sm:$0xff pattern:$0x73625140]  ;;  %v27_v2 = vld.sshfl [vmem:[#allocation1 + $0x8] sm:$0xff pattern:$0x73625140] }
   0xe   :  { %30 = vrot.lane.b32.xlu0 %v26_v1, %s135_s11 }
  0x16   :  { %32 = vrot.lane.b32.xlu0 %v27_v2, %s135_s11 }
  0x80   :  { %v31_v4 = vpop.permute.xlu0 %30 }
  0x88   :  { %v33_v6 = vpop.permute.xlu0 %32 }
  0x89   :  { %v37_v7 = vsel %vm36_vm0, %v31_v4, %v33_v6  ;;  %v38_v9 = vsel %vm36_vm0, %v33_v6, %v31_v4 }
  0x8a   :  { %v43_v8 = vrot.slane %v37_v7, 6 }
  0x8c   :  { %v45_v10 = vsel %vm44_vm1, %v38_v9, %v43_v8 }
  0x8d   :  { %v47_v11 = vsub.f32 %v23_v0, %v45_v10 }
  0x8f   :  { %49 = vst [vmem:[#allocation1] ss:$4 sm:$0xff] %v47_v11 }
  0x96   :  { %v50_v12 = vld.sshfl [vmem:[#allocation1] sm:$0xff pattern:$0x73625140]  ;;  %v51_v13 = vld.sshfl [vmem:[#allocation1 + $0x8] sm:$0xff pattern:$0x73625140] }
  0x97   :  { %v54_v14 = vsel %vm36_vm0, 0.0, %v50_v12  ;;  %v58_v15 = vrot.slane %v51_v13, 6 }
  0x99   :  { %v59_v16 = vsel %vm44_vm1, %v54_v14, %v58_v15 }
  0x9a   :  { %61 = vst [vmem:[#allocation5] sm:$0xf] %v59_v16 }
  0x9b   :  { %72 = dma.vmem_to_hbm [thread:$0]  %s68_s12, 64, %s70_s15, [#allocation4]  }
  0x9c   :  { %132 = dma.done.wait [#allocation4], 64  }
  0x9d   :  { %133 = vsyncadd [#allocation4], 4294967232 }
  0x9e   :  { %77 = vsyncpa [#allocation3], 1 }
  0x9f   :  { %78 = vsyncpa [#allocation4], 1 }

</bundles_post_ra>
